<compile_context>
chip_gen: v7x
topology: tpu7x:2x2x1
jax: 0.10.0
libtpu: 0.0.40
codegen_flags: <defaults>
</compile_context>

<pallas_src>
import jax
import jax.numpy as jnp
from jax.experimental import pallas as pl
from jax.experimental.pallas import tpu as pltpu

# ----------------------------- hyper-params (match module defaults) ----------
GAMMA_NEG = 4.0          # integer-power specialization in the kernel
GAMMA_POS = 1.0
REWEIGH_N = 10.0
CLIP = 0.05
EPS = 1e-6


def _round_up(n, m):
    return ((n + m - 1) // m) * m


# ----------------------------- Pallas kernel ---------------------------------
def _asl_kernel(x_ref, y_ref, invw_ref, out_ref, acc_ref):
    """One (tb, tl) tile of the asymmetric loss, accumulated per grid row.

    x_ref    : (tb, 2, tl) logits (native dtype), class axis in the middle
    y_ref    : (tb, tl) targets in {0, 1} (-1 = ignore / padding)
    invw_ref : (1, tl) f32 precomputed 1/weighting_vector row
    out_ref  : (1, 1, 1) f32 per-grid-row partial sum (already negated)
    acc_ref  : (tb, tl) f32 VMEM running accumulator
    """
    j = pl.program_id(1)

    @pl.when(j == 0)
    def _init():
        acc_ref[...] = jnp.zeros_like(acc_ref)

    xt = x_ref[...].astype(jnp.float32)          # (tb, 2, tl)
    y_raw = y_ref[...].astype(jnp.float32)       # (tb, tl)
    inv_w = invw_ref[...]                        # (1, tl) f32

    valid = y_raw != -1.0                        # ignore label (and padding)
    y = jnp.where(valid, y_raw, 0.0)

    # 2-class softmax over the class axis == sigmoid of the logit difference
    # (stable form: exp of a non-positive argument only).
    d = xt[:, 1, :] - xt[:, 0, :]
    e = jnp.exp(-jnp.abs(d))
    r = 1.0 / (1.0 + e)
    pos = d >= 0.0
    xs_pos = jnp.where(pos, r, e * r)            # softmax class 1
    xs_neg = jnp.where(pos, e * r, r)            # softmax class 0

    # asymmetric clipping of the negative probabilities
    xs_neg = jnp.minimum(xs_neg + CLIP, 1.0)

    # cross-entropy terms; divide by w replaced with multiply by 1/w
    los_pos = y * jnp.log(jnp.maximum(xs_pos, EPS))
    los_neg = (1.0 - y) * jnp.log(jnp.maximum(xs_neg, EPS))
    loss = (los_pos + los_neg) * inv_w

    # asymmetric focusing: (1 - pt) ** (gamma_pos*y + gamma_neg*(1-y))
    # exact integer-power select for binarized targets (gammas 1 and 4);
    # avoids the exp+log that jnp.power with a tensor exponent would emit.
    pt = xs_pos * y + xs_neg * (1.0 - y)
    q = 1.0 - pt
    q2 = q * q
    one_sided_w = jnp.where(y > 0.5, q, q2 * q2)
    loss = loss * one_sided_w

    acc_ref[...] += jnp.where(valid, loss, 0.0)

    @pl.when(j == pl.num_programs(1) - 1)
    def _finalize():
        total = -jnp.sum(acc_ref[...])
        out_ref[...] = jnp.full(out_ref.shape, total, dtype=out_ref.dtype)


# ----------------------------- wrapper ---------------------------------------
def asymmetric_loss_imbalanced(x, y, relation, reweigh_n=REWEIGH_N):
    """x: (B, 2, L) logits; y: (B, L) binarized targets (-1 = ignore);
    relation: (L, L) matrix whose diagonal is the imbalance vector."""
    B, C, L = x.shape
    assert C == 2, "softmax(dim=1) with pos/neg slices implies 2 classes"

    # ---- weighting vector (tiny, plain JAX glue) ----
    wvec = jnp.diag(relation).astype(jnp.float32) / reweigh_n
    wvec = jnp.where(wvec == 0.0, wvec + 15.0 * jnp.max(wvec), wvec)
    inv_w = 1.0 / wvec                                             # (L,)

    # ---- lane-dense tiling / padding (pads masked via y = -1) ----
    L_pad = _round_up(L, 128)
    tl = next(c for c in (512, 256, 128) if L_pad % c == 0)
    B_pad = _round_up(B, 8)
    tb = next(c for c in (128, 64, 32, 16, 8) if B_pad % c == 0)

    if B_pad != B or L_pad != L:
        x = jnp.pad(x, ((0, B_pad - B), (0, 0), (0, L_pad - L)))
        y = jnp.pad(y, ((0, B_pad - B), (0, L_pad - L)), constant_values=-1)
    if L_pad != L:
        inv_w = jnp.pad(inv_w, (0, L_pad - L), constant_values=1.0)
    inv_w2d = inv_w.reshape(1, L_pad)

    nb, nl = B_pad // tb, L_pad // tl

    partials = pl.pallas_call(
        _asl_kernel,
        out_shape=jax.ShapeDtypeStruct((nb, 1, 1), jnp.float32),
        grid=(nb, nl),
        in_specs=[
            pl.BlockSpec((tb, 2, tl), lambda i, j: (i, 0, j)),   # x (native dtype)
            pl.BlockSpec((tb, tl), lambda i, j: (i, j)),         # y (native dtype)
            pl.BlockSpec((1, tl), lambda i, j: (0, j)),          # 1/w row
        ],
        out_specs=pl.BlockSpec((1, 1, 1), lambda i, j: (i, 0, 0)),
        scratch_shapes=[pltpu.VMEM((tb, tl), jnp.float32)],
        compiler_params=pltpu.CompilerParams(
            dimension_semantics=("parallel", "arbitrary")),
    )(x, y, inv_w2d)

    return jnp.sum(partials)


# ----------------------------- pure-JAX reference -----------------------------
def _reference(x, y, relation, reweigh_n=REWEIGH_N):
    B, _, L = x.shape
    diag = jnp.diag(relation).astype(jnp.float32)
    w = diag / reweigh_n
    w = jnp.where(w == 0.0, w + 15.0 * jnp.max(w), w)
    w_full = jnp.broadcast_to(w[None, :], (B, L)).reshape(-1)

    xsm = jax.nn.softmax(x.astype(jnp.float32), axis=1)
    xs_pos = xsm[:, 1, :].reshape(-1)
    xs_neg = xsm[:, 0, :].reshape(-1)
    yf = y.reshape(-1).astype(jnp.float32)

    xs_neg = jnp.minimum(xs_neg + CLIP, 1.0)
    los_pos = yf * jnp.log(jnp.maximum(xs_pos, EPS))
    los_neg = (1.0 - yf) * jnp.log(jnp.maximum(xs_neg, EPS))
    loss = (los_pos + los_neg) / w_full
    pt = xs_pos * yf + xs_neg * (1.0 - yf)
    gam = GAMMA_POS * yf + GAMMA_NEG * (1.0 - yf)
    loss = loss * jnp.power(1.0 - pt, gam)
    return -jnp.sum(loss)


# ----------------------------- main -------------------------------------------
if __name__ == "__main__":
    B, L = 2, 16   # batch=2, 16 labels, 2-class (pos/neg) logits per label

    key = jax.random.PRNGKey(0)
    k_x, k_y = jax.random.split(key)

    x = jax.random.normal(k_x, (B, 2, L), dtype=jnp.float32)
    y = jax.random.bernoulli(k_y, p=0.5, shape=(B, L)).astype(jnp.float32)

    # TODO(synk): the real module loads `relation` via torch.load(cfg.path_to_relation);
    # synthesized deterministically here (diagonal contains a zero so the
    # zero-replacement branch is exercised).
    relation = jnp.diag(jnp.arange(L, dtype=jnp.float32))

    loss_fn = jax.jit(asymmetric_loss_imbalanced)
    out = jax.block_until_ready(loss_fn(x, y, relation))

    ref = _reference(x, y, relation)
    assert jnp.allclose(out, ref, rtol=1e-4, atol=1e-4), (out, ref)

    print("KERNEL_OK")
</pallas_src>

<mosaic_0001>
module attributes {stable_mosaic.version = 11 : i64} {
  func.func @_asl_kernel(%arg0: i32, %arg1: i32, %arg2: memref<8x2x128xf32, #tpu.memory_space<vmem>>, %arg3: memref<8x128xf32, #tpu.memory_space<vmem>>, %arg4: memref<1x128xf32, #tpu.memory_space<vmem>>, %arg5: memref<1x1x1xf32, #tpu.memory_space<vmem>>, %arg6: memref<8x128xf32, #tpu.memory_space<vmem>>) attributes {dimension_semantics = [#tpu.dimension_semantics<parallel>, #tpu.dimension_semantics<arbitrary>], iteration_bounds = array<i64: 1, 1>, scalar_prefetch = 0 : i64, scratch_operands = 1 : i64, tpu.core_type = #tpu.core_type<tc>, window_params = [{transform_indices = @transform_0, window_bounds = array<i64: 8, 2, 128>}, {transform_indices = @transform_1, window_bounds = array<i64: 8, 128>}, {transform_indices = @transform_2, window_bounds = array<i64: 1, 128>}, {transform_indices = @transform_3, window_bounds = array<i64: 1, 1, 1>}]} {
    %c0_i32 = arith.constant 0 : i32
    %0 = arith.cmpi eq, %arg1, %c0_i32 : i32
    %1 = arith.extui %0 : i1 to i32
    %c0_i32_0 = arith.constant 0 : i32
    %2 = arith.cmpi ne, %1, %c0_i32_0 : i32
    scf.if %2 {
      %cst_27 = arith.constant 0.000000e+00 : f32
      %67 = vector.broadcast %cst_27 : f32 to vector<8x128xf32>
      %c0_28 = arith.constant 0 : index
      %c0_29 = arith.constant 0 : index
      %68 = vector.load %arg6[%c0_28, %c0_29] : memref<8x128xf32, #tpu.memory_space<vmem>>, vector<8x128xf32>
      tpu.vector_store %arg6[%c0_28, %c0_29], %67 {strides = array<i32>} : memref<8x128xf32, #tpu.memory_space<vmem>>, vector<8x128xf32>,
    } else {
    }
    %c0 = arith.constant 0 : index
    %c0_1 = arith.constant 0 : index
    %c0_2 = arith.constant 0 : index
    %3 = vector.load %arg2[%c0, %c0_1, %c0_2] : memref<8x2x128xf32, #tpu.memory_space<vmem>>, vector<8x2x128xf32>
    %c0_3 = arith.constant 0 : index
    %c0_4 = arith.constant 0 : index
    %4 = vector.load %arg3[%c0_3, %c0_4] : memref<8x128xf32, #tpu.memory_space<vmem>>, vector<8x128xf32>
    %c0_5 = arith.constant 0 : index
    %c0_6 = arith.constant 0 : index
    %5 = vector.load %arg4[%c0_5, %c0_6] : memref<1x128xf32, #tpu.memory_space<vmem>>, vector<1x128xf32>
    %cst = arith.constant -1.000000e+00 : f32
    %6 = vector.broadcast %cst : f32 to vector<8x128xf32>
    %7 = arith.cmpf one, %4, %6 : vector<8x128xf32>
    %cst_7 = arith.constant 0.000000e+00 : f32
    %8 = vector.broadcast %cst_7 : f32 to vector<8x128xf32>
    %9 = arith.select %7, %4, %8 : vector<8x128xi1>, vector<8x128xf32>
    %10 = vector.extract_strided_slice %3 {offsets = [0, 1, 0], sizes = [8, 1, 128], strides = [1, 1, 1]} : vector<8x2x128xf32> to vector<8x1x128xf32>
    %11 = vector.shape_cast %10 : vector<8x1x128xf32> to vector<8x128xf32>
    %12 = vector.extract_strided_slice %3 {offsets = [0, 0, 0], sizes = [8, 1, 128], strides = [1, 1, 1]} : vector<8x2x128xf32> to vector<8x1x128xf32>
    %13 = vector.shape_cast %12 : vector<8x1x128xf32> to vector<8x128xf32>
    %14 = arith.subf %11, %13 : vector<8x128xf32>
    %15 = math.absf %14 : vector<8x128xf32>
    %cst_8 = arith.constant 0.000000e+00 : f32
    %16 = vector.broadcast %cst_8 : f32 to vector<8x128xf32>
    %17 = arith.subf %16, %15 : vector<8x128xf32>
    %18 = math.exp %17 : vector<8x128xf32>
    %cst_9 = arith.constant 1.000000e+00 : f32
    %19 = vector.broadcast %cst_9 : f32 to vector<8x128xf32>
    %20 = arith.addf %19, %18 : vector<8x128xf32>
    %cst_10 = arith.constant 1.000000e+00 : f32
    %21 = vector.broadcast %cst_10 : f32 to vector<8x128xf32>
    %22 = arith.divf %21, %20 : vector<8x128xf32>
    %cst_11 = arith.constant 0.000000e+00 : f32
    %23 = vector.broadcast %cst_11 : f32 to vector<8x128xf32>
    %24 = arith.cmpf oge, %14, %23 : vector<8x128xf32>
    %25 = arith.mulf %18, %22 : vector<8x128xf32>
    %26 = arith.select %24, %22, %25 : vector<8x128xi1>, vector<8x128xf32>
    %27 = arith.mulf %18, %22 : vector<8x128xf32>
    %28 = arith.select %24, %27, %22 : vector<8x128xi1>, vector<8x128xf32>
    %cst_12 = arith.constant 5.000000e-02 : f32
    %29 = vector.broadcast %cst_12 : f32 to vector<8x128xf32>
    %30 = arith.addf %28, %29 : vector<8x128xf32>
    %cst_13 = arith.constant 1.000000e+00 : f32
    %31 = vector.broadcast %cst_13 : f32 to vector<8x128xf32>
    %32 = arith.minimumf %30, %31 : vector<8x128xf32>
    %cst_14 = arith.constant 9.99999997E-7 : f32
    %33 = vector.broadcast %cst_14 : f32 to vector<8x128xf32>
    %34 = arith.maximumf %26, %33 : vector<8x128xf32>
    %35 = math.log %34 : vector<8x128xf32>
    %36 = arith.mulf %9, %35 : vector<8x128xf32>
    %cst_15 = arith.constant 1.000000e+00 : f32
    %37 = vector.broadcast %cst_15 : f32 to vector<8x128xf32>
    %38 = arith.subf %37, %9 : vector<8x128xf32>
    %cst_16 = arith.constant 9.99999997E-7 : f32
    %39 = vector.broadcast %cst_16 : f32 to vector<8x128xf32>
    %40 = arith.maximumf %32, %39 : vector<8x128xf32>
    %41 = math.log %40 : vector<8x128xf32>
    %42 = arith.mulf %38, %41 : vector<8x128xf32>
    %43 = arith.addf %36, %42 : vector<8x128xf32>
    %44 = vector.broadcast %5 : vector<1x128xf32> to vector<8x128xf32>
    %45 = arith.mulf %43, %44 : vector<8x128xf32>
    %46 = arith.mulf %26, %9 : vector<8x128xf32>
    %cst_17 = arith.constant 1.000000e+00 : f32
    %47 = vector.broadcast %cst_17 : f32 to vector<8x128xf32>
    %48 = arith.subf %47, %9 : vector<8x128xf32>
    %49 = arith.mulf %32, %48 : vector<8x128xf32>
    %50 = arith.addf %46, %49 : vector<8x128xf32>
    %cst_18 = arith.constant 1.000000e+00 : f32
    %51 = vector.broadcast %cst_18 : f32 to vector<8x128xf32>
    %52 = arith.subf %51, %50 : vector<8x128xf32>
    %53 = arith.mulf %52, %52 : vector<8x128xf32>
    %cst_19 = arith.constant 5.000000e-01 : f32
    %54 = vector.broadcast %cst_19 : f32 to vector<8x128xf32>
    %55 = arith.cmpf ogt, %9, %54 : vector<8x128xf32>
    %56 = arith.mulf %53, %53 : vector<8x128xf32>
    %57 = arith.select %55, %52, %56 : vector<8x128xi1>, vector<8x128xf32>
    %58 = arith.mulf %45, %57 : vector<8x128xf32>
    %c0_20 = arith.constant 0 : index
    %c0_21 = arith.constant 0 : index
    %59 = vector.load %arg6[%c0_20, %c0_21] : memref<8x128xf32, #tpu.memory_space<vmem>>, vector<8x128xf32>
    %cst_22 = arith.constant 0.000000e+00 : f32
    %60 = vector.broadcast %cst_22 : f32 to vector<8x128xf32>
    %61 = arith.select %7, %58, %60 : vector<8x128xi1>, vector<8x128xf32>
    %62 = arith.addf %59, %61 : vector<8x128xf32>
    %c0_23 = arith.constant 0 : index
    %c0_24 = arith.constant 0 : index
    %63 = vector.load %arg6[%c0_23, %c0_24] : memref<8x128xf32, #tpu.memory_space<vmem>>, vector<8x128xf32>
    tpu.vector_store %arg6[%c0_23, %c0_24], %62 {strides = array<i32>} : memref<8x128xf32, #tpu.memory_space<vmem>>, vector<8x128xf32>,
    %c0_i32_25 = arith.constant 0 : i32
    %64 = arith.cmpi eq, %arg1, %c0_i32_25 : i32
    %65 = arith.extui %64 : i1 to i32
    %c0_i32_26 = arith.constant 0 : i32
    %66 = arith.cmpi ne, %65, %c0_i32_26 : i32
    scf.if %66 {
      %c0_27 = arith.constant 0 : index
      %c0_28 = arith.constant 0 : index
      %67 = vector.load %arg6[%c0_27, %c0_28] : memref<8x128xf32, #tpu.memory_space<vmem>>, vector<8x128xf32>
      %68 = vector.shape_cast %67 : vector<8x128xf32> to vector<1x8x128xf32>
      %cst_29 = arith.constant dense<0.000000e+00> : vector<1xf32>
      %69 = vector.multi_reduction <add>, %68, %cst_29 [1, 2] : vector<1x8x128xf32> to vector<1xf32>
      %70 = vector.shape_cast %69 : vector<1xf32> to vector<1x1x1xf32>
      %71 = vector.extract %70[0, 0, 0] : f32 from vector<1x1x1xf32>
      %cst_30 = arith.constant 0.000000e+00 : f32
      %72 = arith.subf %cst_30, %71 : f32
      %73 = vector.broadcast %72 : f32 to vector<1x1x1xf32>
      %c0_31 = arith.constant 0 : index
      %c0_32 = arith.constant 0 : index
      %c0_33 = arith.constant 0 : index
      %74 = vector.load %arg5[%c0_31, %c0_32, %c0_33] : memref<1x1x1xf32, #tpu.memory_space<vmem>>, vector<1x1x1xf32>
      tpu.vector_store %arg5[%c0_31, %c0_32, %c0_33], %73 {strides = array<i32>} : memref<1x1x1xf32, #tpu.memory_space<vmem>>, vector<1x1x1xf32>,
    } else {
    }
    return
  }
  func.func @transform_0(%arg0: i32, %arg1: i32) -> (i32, i32, i32) {
    %c0_i32 = arith.constant 0 : i32
    %c0_i32_0 = arith.constant 0 : i32
    return %arg0, %c0_i32, %arg1 : i32, i32, i32
  }
  func.func @transform_1(%arg0: i32, %arg1: i32) -> (i32, i32) {
    %c0_i32 = arith.constant 0 : i32
    return %arg0, %arg1 : i32, i32
  }
  func.func @transform_2(%arg0: i32, %arg1: i32) -> (i32, i32) {
    %c0_i32 = arith.constant 0 : i32
    %c0_i32_0 = arith.constant 0 : i32
    return %c0_i32, %arg1 : i32, i32
  }
  func.func @transform_3(%arg0: i32, %arg1: i32) -> (i32, i32, i32) {
    %c0_i32 = arith.constant 0 : i32
    %c0_i32_0 = arith.constant 0 : i32
    %c0_i32_1 = arith.constant 0 : i32
    return %arg0, %c0_i32, %c0_i32_0 : i32, i32, i32
  }
}

</mosaic_0001>

<bundles_post_ra>
// kernel: asymmetric_loss_imbalanced.1
= control target key start
LH: loop header
LB: loop body
LE: loop exit
PB: predicated region body
PF: predicated region fallthrough
CT: control target
= control target key end

     0   :  { %8 = vsyncpa [#allocation4], 0  ;;  %vm201_vm9 = vcmask 1041409   ;;  %vm204_vm10 = vcmask 1042434   ;;  %vm207_vm11 = vcmask 1043459   ;;  %vm210_vm12 = vcmask 1044484   ;;  %s794_s0 = inlined_call_operand.vmem [shape: f32[8,2,128], index: 0, kind: input, shape index: {}]   ;;  %s795_s1 = inlined_call_operand.vmem [shape: f32[8,128], index: 1, kind: input, shape index: {}]   ;;  %s796_s2 = inlined_call_operand.vmem [shape: f32[1,128], index: 2, kind: input, shape index: {}]   ;;  %s797_s3 = inlined_call_operand.hbm [shape: f32[1,1,1], index: 3, kind: output, shape index: {}]  }
   0x1   :  { %v20_v0 = vld [vmem:[%s794_s0] sm:$0x3]  ;;  %v21_v1 = vld [vmem:[%s794_s0 + $0x2] sm:$0x3]  ;;  %v22_v2 = vld [vmem:[%s794_s0 + $0x4] sm:$0x3] }
   0x2   :  { %v23_v3 = vld [vmem:[%s794_s0 + $0x6] sm:$0x3]  ;;  %v24_v4 = vld [vmem:[%s794_s0 + $0x8] sm:$0x3]  ;;  %v25_v5 = vld [vmem:[%s794_s0 + $0xa] sm:$0x3] }
   0x3   :  { %v26_v6 = vld [vmem:[%s794_s0 + $0xc] sm:$0x3]  ;;  %v27_v7 = vld [vmem:[%s794_s0 + $0xe] sm:$0x3]  ;;  %v40_v8 = vrot.slane %v20_v0, 7  ;;  %v41_v9 = vrot.slane %v21_v1, 7 }
   0x4   :  { %v42_v10 = vrot.slane %v22_v2, 7  ;;  %v43_v11 = vrot.slane %v23_v3, 7  ;;  %v44_v12 = vrot.slane %v24_v4, 7  ;;  %v45_v13 = vrot.slane %v25_v5, 7  ;;  %v608_v50 = vld [vmem:[%s795_s1] sm:$0xff] }
   0x5   :  { %v46_v14 = vrot.slane %v26_v6, 7  ;;  %v47_v15 = vrot.slane %v27_v7, 7  ;;  %v581_v16 = vsub.f32 %v20_v0, %v40_v8  ;;  %v583_v17 = vsub.f32 %v21_v1, %v41_v9 }
   0x6   :  { %v585_v18 = vsub.f32 %v22_v2, %v42_v10  ;;  %v587_v19 = vsub.f32 %v23_v3, %v43_v11  ;;  %v589_v20 = vsub.f32 %v24_v4, %v44_v12  ;;  %v591_v21 = vsub.f32 %v25_v5, %v45_v13 }
   0x7   :  { %v593_v22 = vsub.f32 %v26_v6, %v46_v14  ;;  %v595_v23 = vsub.f32 %v27_v7, %v47_v15  ;;  %v64_v24 = vand.u32 2147483647, %v581_v16  ;;  %v65_v25 = vand.u32 2147483647, %v583_v17 }
   0x8   :  { %v66_v26 = vand.u32 2147483647, %v585_v18  ;;  %v67_v27 = vand.u32 2147483647, %v587_v19  ;;  %v68_v28 = vand.u32 2147483647, %v589_v20 }
   0x9   :  { %v69_v29 = vand.u32 2147483647, %v591_v21  ;;  %v70_v30 = vand.u32 2147483647, %v593_v22  ;;  %v71_v31 = vand.u32 2147483647, %v595_v23 }
   0xa   :  { %v72_v32 = vsub.f32 0.0, %v64_v24  ;;  %v73_v33 = vsub.f32 0.0, %v65_v25  ;;  %v74_v34 = vsub.f32 0.0, %v66_v26  ;;  %v75_v35 = vsub.f32 0.0, %v67_v27 }
   0xb   :  { %v76_v36 = vsub.f32 0.0, %v68_v28  ;;  %v77_v37 = vsub.f32 0.0, %v69_v29  ;;  %v78_v38 = vsub.f32 0.0, %v70_v30  ;;  %v79_v41 = vsub.f32 0.0, %v71_v31 }
   0xc   :  { %v80_v39 = vmul.f32 1.442695, %v72_v32  ;;  %v82_v40 = vmul.f32 1.442695, %v73_v33  ;;  %v84_v42 = vmul.f32 1.442695, %v74_v34 }
   0xd   :  { %v86_v43 = vmul.f32 1.442695, %v75_v35  ;;  %v88_v44 = vmul.f32 1.442695, %v76_v36  ;;  %v90_v45 = vmul.f32 1.442695, %v77_v37 }
   0xe   :  { %448 = vpow2.f32 %v80_v39  ;;  %v92_v46 = vmul.f32 1.442695, %v78_v38  ;;  %v94_v47 = vmul.f32 1.442695, %v79_v41  ;;  %vm30_vm0 = vcmp.ne.f32.partialorder %v608_v50, -1.0 }
   0xf   :  { %450 = vpow2.f32 %v82_v40  ;;  %v614_v63 = vsel %vm30_vm0, %v608_v50, 0.0  ;;  %vm120_vm1 = vcmp.ge.f32.partialorder %v581_v16, 0.0  ;;  %vm121_vm2 = vcmp.ge.f32.partialorder %v583_v17, 0.0 }
  0x10   :  { %452 = vpow2.f32 %v84_v42  ;;  %v619_v2 = vsub.f32 1.0, %v614_v63  ;;  %vm122_vm3 = vcmp.ge.f32.partialorder %v585_v18, 0.0  ;;  %vm123_vm4 = vcmp.ge.f32.partialorder %v587_v19, 0.0 }
  0x11   :  { %454 = vpow2.f32 %v86_v43  ;;  %vm124_vm5 = vcmp.ge.f32.partialorder %v589_v20, 0.0  ;;  %vm125_vm6 = vcmp.ge.f32.partialorder %v591_v21, 0.0  ;;  %vm126_vm7 = vcmp.ge.f32.partialorder %v593_v22, 0.0 }
  0x12   :  { %456 = vpow2.f32 %v88_v44  ;;  %vm127_vm8 = vcmp.ge.f32.partialorder %v595_v23, 0.0  ;;  %v281_v3 = vrot.slane %v614_v63, 7  ;;  %v282_v4 = vrot.slane %v614_v63, 1 }
  0x13   :  { %458 = vpow2.f32 %v90_v45  ;;  %v283_v6 = vrot.slane %v614_v63, 2  ;;  %v284_v7 = vrot.slane %v614_v63, 3  ;;  %v285_v8 = vrot.slane %v614_v63, 4 }
  0x14   :  { %460 = vpow2.f32 %v92_v46  ;;  %v286_v9 = vrot.slane %v614_v63, 5  ;;  %v287_v12 = vrot.slane %v614_v63, 6  ;;  %v305_v13 = vrot.slane %v619_v2, 7 }
  0x15   :  { %462 = vpow2.f32 %v94_v47  ;;  %v306_v14 = vrot.slane %v619_v2, 1  ;;  %v307_v25 = vrot.slane %v619_v2, 2  ;;  %v308_v26 = vrot.slane %v619_v2, 3 }
  0x16   :  { %v309_v27 = vrot.slane %v619_v2, 4  ;;  %v310_v31 = vrot.slane %v619_v2, 5  ;;  %v311_v32 = vrot.slane %v619_v2, 6  ;;  %vm213_vm13 = vcmask 1045509  }
  0x17   :  { %vm216_vm14 = vcmask 1046534   ;;  %vm219_vm15 = vcmask 1047559  }
  0x18   :  { %v449_v48 = vpop.eup %448 }
  0x19   :  { %v451_v49 = vpop.eup %450  ;;  %v96_v51 = vadd.f32 1.0, %v449_v48 }
  0x1a   :  { %v453_v52 = vpop.eup %452  ;;  %v97_v53 = vadd.f32 1.0, %v451_v49 }
  0x1b   :  { %v455_v54 = vpop.eup %454  ;;  %v98_v55 = vadd.f32 1.0, %v453_v52  ;;  %464 = vrcp.f32 %v96_v51 }
  0x1c   :  { %v457_v56 = vpop.eup %456  ;;  %v99_v57 = vadd.f32 1.0, %v455_v54  ;;  %466 = vrcp.f32 %v97_v53 }
  0x1d   :  { %v459_v58 = vpop.eup %458  ;;  %v100_v59 = vadd.f32 1.0, %v457_v56  ;;  %468 = vrcp.f32 %v98_v55 }
  0x1e   :  { %v461_v60 = vpop.eup %460  ;;  %v101_v61 = vadd.f32 1.0, %v459_v58  ;;  %470 = vrcp.f32 %v99_v57 }
  0x1f   :  { %v463_v62 = vpop.eup %462  ;;  %v102_v0 = vadd.f32 1.0, %v461_v60  ;;  %472 = vrcp.f32 %v100_v59 }
  0x20   :  { %v103_v1 = vadd.f32 1.0, %v463_v62  ;;  %474 = vrcp.f32 %v101_v61 }
  0x21   :  { %476 = vrcp.f32 %v102_v0 }
  0x22   :  { %478 = vrcp.f32 %v103_v1 }
  0x25   :  { %v465_v5 = vpop.eup %464 }
  0x26   :  { %v467_v10 = vpop.eup %466  ;;  %v128_v11 = vmul.f32 %v465_v5, %v449_v48 }
  0x27   :  { %v469_v15 = vpop.eup %468  ;;  %v129_v24 = vmul.f32 %v467_v10, %v451_v49 }
  0x28   :  { %v471_v28 = vpop.eup %470  ;;  %v130_v29 = vmul.f32 %v469_v15, %v453_v52  ;;  %v144_v30 = vsel %vm120_vm1, %v128_v11, %v465_v5  ;;  %v136_v35 = vsel %vm120_vm1, %v465_v5, %v128_v11  ;;  %vm352_vm1 = vcmp.gt.f32.partialorder %v614_v63, 0.5 }
  0x29   :  { %v473_v33 = vpop.eup %472  ;;  %v131_v34 = vmul.f32 %v471_v28, %v455_v54  ;;  %v137_v36 = vsel %vm121_vm2, %v467_v10, %v129_v24  ;;  %v145_v37 = vsel %vm121_vm2, %v129_v24, %v467_v10  ;;  %v653_v42 = vadd.f32 0.05, %v144_v30 }
  0x2a   :  { %v475_v38 = vpop.eup %474  ;;  %v132_v39 = vmul.f32 %v473_v33, %v457_v56  ;;  %v138_v40 = vsel %vm122_vm3, %v469_v15, %v130_v29  ;;  %v146_v41 = vsel %vm122_vm3, %v130_v29, %v469_v15  ;;  %v153_v17 = vadd.f32 0.05, %v145_v37 }
  0x2b   :  { %v477_v43 = vpop.eup %476  ;;  %v133_v44 = vmul.f32 %v475_v38, %v459_v58  ;;  %v139_v16 = vsel %vm123_vm4, %v471_v28, %v131_v34  ;;  %v147_v45 = vsel %vm123_vm4, %v131_v34, %v471_v28  ;;  %v154_v49 = vadd.f32 0.05, %v146_v41 }
  0x2c   :  { %v479_v46 = vpop.eup %478  ;;  %v134_v47 = vmul.f32 %v477_v43, %v461_v60  ;;  %v148_v48 = vsel %vm124_vm5, %v132_v39, %v473_v33  ;;  %v155_v51 = vadd.f32 0.05, %v147_v45  ;;  %v140_v52 = vsel %vm124_vm5, %v473_v33, %v132_v39 }
  0x2d   :  { %v135_v18 = vmul.f32 %v479_v46, %v463_v62  ;;  %v149_v53 = vsel %vm125_vm6, %v133_v44, %v475_v38  ;;  %v156_v54 = vadd.f32 0.05, %v148_v48  ;;  %v141_v19 = vsel %vm125_vm6, %v475_v38, %v133_v44 }
  0x2e   :  { %v142_v55 = vsel %vm126_vm7, %v477_v43, %v134_v47  ;;  %v150_v56 = vsel %vm126_vm7, %v134_v47, %v477_v43  ;;  %v157_v57 = vadd.f32 0.05, %v149_v53  ;;  %v160_v60 = vmin.f32 %v653_v42, 1.0 }
  0x2f   :  { %v143_v58 = vsel %vm127_vm8, %v479_v46, %v135_v18  ;;  %v151_v20 = vsel %vm127_vm8, %v135_v18, %v479_v46  ;;  %v158_v59 = vadd.f32 0.05, %v150_v56  ;;  %v161_v62 = vmin.f32 %v153_v17, 1.0 }
  0x30   :  { %v159_v61 = vadd.f32 0.05, %v151_v20  ;;  %v162_v21 = vmin.f32 %v154_v49, 1.0  ;;  %v163_v0 = vmin.f32 %v155_v51, 1.0  ;;  %v164_v1 = vmin.f32 %v156_v54, 1.0 }
  0x31   :  { %v165_v5 = vmin.f32 %v157_v57, 1.0  ;;  %v168_v10 = vmax.f32 %v136_v35, 1e-06  ;;  %v169_v11 = vmax.f32 %v137_v36, 1e-06  ;;  %v166_v22 = vmin.f32 %v158_v59, 1.0 }
  0x32   :  { %v167_v15 = vmin.f32 %v159_v61, 1.0  ;;  %v170_v24 = vmax.f32 %v138_v40, 1e-06  ;;  %v171_v28 = vmax.f32 %v139_v16, 1e-06  ;;  %v296_v23 = vmul.f32 %v281_v3, %v136_v35 }
  0x33   :  { %v172_v29 = vmax.f32 %v140_v52, 1e-06  ;;  %v173_v30 = vmax.f32 %v141_v19, 1e-06  ;;  %480 = vlog2.f32 %v168_v10  ;;  %v174_v33 = vmax.f32 %v142_v55, 1e-06 }
  0x34   :  { %v175_v34 = vmax.f32 %v143_v58, 1e-06  ;;  %482 = vlog2.f32 %v169_v11  ;;  %v224_v37 = vmax.f32 %v160_v60, 1e-06  ;;  %v225_v38 = vmax.f32 %v161_v62, 1e-06 }
  0x35   :  { %484 = vlog2.f32 %v170_v24  ;;  %v226_v39 = vmax.f32 %v162_v21, 1e-06  ;;  %v227_v41 = vmax.f32 %v163_v0, 1e-06  ;;  %v228_v42 = vmax.f32 %v164_v1, 1e-06 }
  0x36   :  { %486 = vlog2.f32 %v171_v28  ;;  %v229_v43 = vmax.f32 %v165_v5, 1e-06  ;;  %v230_v44 = vmax.f32 %v166_v22, 1e-06  ;;  %v297_v45 = vmul.f32 %v137_v36, %v614_v63 }
  0x37   :  { %488 = vlog2.f32 %v172_v29  ;;  %v298_v17 = vmul.f32 %v282_v4, %v138_v40  ;;  %v299_v3 = vmul.f32 %v283_v6, %v139_v16  ;;  %v300_v35 = vmul.f32 %v284_v7, %v140_v52 }
  0x38   :  { %490 = vlog2.f32 %v173_v30  ;;  %v301_v46 = vmul.f32 %v285_v8, %v141_v19  ;;  %v302_v47 = vmul.f32 %v286_v9, %v142_v55  ;;  %v303_v36 = vmul.f32 %v287_v12, %v143_v58 }
  0x39   :  { %492 = vlog2.f32 %v174_v33  ;;  %v320_v4 = vmul.f32 %v305_v13, %v160_v60  ;;  %v321_v6 = vmul.f32 %v619_v2, %v161_v62  ;;  %v322_v7 = vmul.f32 %v306_v14, %v162_v21 }
  0x3a   :  { %494 = vlog2.f32 %v175_v34  ;;  %v323_v8 = vmul.f32 %v307_v25, %v163_v0  ;;  %v324_v9 = vmul.f32 %v308_v26, %v164_v1  ;;  %v325_v12 = vmul.f32 %v309_v27, %v165_v5 }
  0x3b   :  { %496 = vlog2.f32 %v224_v37  ;;  %v326_v13 = vmul.f32 %v310_v31, %v166_v22  ;;  %v327_v40 = vmul.f32 %v311_v32, %v167_v15  ;;  %v231_v16 = vmax.f32 %v167_v15, 1e-06 }
  0x3c   :  { %498 = vlog2.f32 %v225_v38  ;;  %v328_v14 = vadd.f32 %v320_v4, %v296_v23  ;;  %v329_v48 = vadd.f32 %v321_v6, %v297_v45  ;;  %v330_v26 = vadd.f32 %v322_v7, %v298_v17 }
  0x3d   :  { %v481_v25 = vpop.eup %480  ;;  %500 = vlog2.f32 %v226_v39  ;;  %v331_v49 = vadd.f32 %v323_v8, %v299_v3  ;;  %v332_v51 = vadd.f32 %v324_v9, %v300_v35  ;;  %v333_v27 = vadd.f32 %v325_v12, %v301_v46 }
  0x3e   :  { %v483_v18 = vpop.eup %482  ;;  %v177_v52 = vmul.f32 0.6931472, %v481_v25  ;;  %502 = vlog2.f32 %v227_v41  ;;  %v334_v31 = vadd.f32 %v326_v13, %v302_v47  ;;  %v335_v32 = vadd.f32 %v327_v40, %v303_v36 }
  0x3f   :  { %v485_v53 = vpop.eup %484  ;;  %v179_v54 = vmul.f32 0.6931472, %v483_v18  ;;  %504 = vlog2.f32 %v228_v42  ;;  %v706_v19 = vsub.f32 1.0, %v328_v14  ;;  %v708_v58 = vsub.f32 1.0, %v329_v48 }
  0x40   :  { %v487_v55 = vpop.eup %486  ;;  %v181_v56 = vmul.f32 0.6931472, %v485_v53  ;;  %v200_v57 = vrot.slane %v177_v52, 1  ;;  %506 = vlog2.f32 %v229_v43  ;;  %v710_v60 = vsub.f32 1.0, %v330_v26 }
  0x41   :  { %v489_v20 = vpop.eup %488  ;;  %v183_v59 = vmul.f32 0.6931472, %v487_v55  ;;  %508 = vlog2.f32 %v230_v44  ;;  %v712_v61 = vsub.f32 1.0, %v331_v49  ;;  %v715_v22 = vsub.f32 1.0, %v332_v51 }
  0x42   :  { %v491_v62 = vpop.eup %490  ;;  %v185_v21 = vmul.f32 0.6931472, %v489_v20  ;;  %v202_v0 = vsel %vm201_vm9, %v179_v54, %v200_v57  ;;  %v203_v1 = vrot.slane %v181_v56, 7  ;;  %510 = vlog2.f32 %v231_v16 }
  0x43   :  { %v493_v5 = vpop.eup %492  ;;  %v187_v10 = vmul.f32 0.6931472, %v491_v62  ;;  %v206_v11 = vrot.slane %v183_v59, 6  ;;  %v717_v15 = vsub.f32 1.0, %v333_v27  ;;  %v720_v23 = vsub.f32 1.0, %v334_v31 }
  0x44   :  { %v495_v24 = vpop.eup %494  ;;  %v189_v28 = vmul.f32 0.6931472, %v493_v5  ;;  %v205_v29 = vsel %vm204_vm10, %v203_v1, %v202_v0  ;;  %v209_v30 = vrot.slane %v185_v21, 5  ;;  %v723_v39 = vsub.f32 1.0, %v335_v32 }
  0x45   :  { %v497_v33 = vpop.eup %496  ;;  %v191_v34 = vmul.f32 0.6931472, %v495_v24  ;;  %v208_v37 = vsel %vm207_vm11, %v206_v11, %v205_v29  ;;  %v212_v38 = vrot.slane %v187_v10, 4  ;;  %v344_v45 = vmul.f32 %v706_v19, %v706_v19 }
  0x46   :  { %v499_v41 = vpop.eup %498  ;;  %v211_v42 = vsel %vm210_vm12, %v209_v30, %v208_v37  ;;  %v215_v43 = vrot.slane %v189_v28, 3  ;;  %v233_v44 = vmul.f32 0.6931472, %v497_v33  ;;  %v345_v47 = vmul.f32 %v708_v58, %v708_v58 }
  0x47   :  { %v501_v17 = vpop.eup %500  ;;  %v214_v3 = vsel %vm213_vm13, %v212_v38, %v211_v42  ;;  %v218_v35 = vrot.slane %v191_v34, 2  ;;  %v235_v46 = vmul.f32 0.6931472, %v499_v41  ;;  %v346_v8 = vmul.f32 %v710_v60, %v710_v60 }
  0x48   :  { %v503_v36 = vpop.eup %502  ;;  %v217_v4 = vsel %vm216_vm14, %v215_v43, %v214_v3  ;;  %v237_v6 = vmul.f32 0.6931472, %v501_v17  ;;  %v256_v7 = vrot.slane %v233_v44, 1  ;;  %v347_v40 = vmul.f32 %v712_v61, %v712_v61 }
  0x49   :  { %v505_v9 = vpop.eup %504  ;;  %v220_v12 = vsel %vm219_vm15, %v218_v35, %v217_v4  ;;  %v239_v13 = vmul.f32 0.6931472, %v503_v36  ;;  %v348_v16 = vmul.f32 %v715_v22, %v715_v22  ;;  %v349_v49 = vmul.f32 %v717_v15, %v717_v15 }
  0x4a   :  { %v507_v14 = vpop.eup %506  ;;  %v241_v48 = vmul.f32 0.6931472, %v505_v9  ;;  %v257_v25 = vsel %vm201_vm9, %v235_v46, %v256_v7  ;;  %v258_v26 = vrot.slane %v237_v6, 7  ;;  %v222_v18 = vmul.f32 %v220_v12, %v614_v63 }
  0x4b   :  { %v509_v51 = vpop.eup %508  ;;  %v243_v52 = vmul.f32 0.6931472, %v507_v14  ;;  %v260_v27 = vrot.slane %v239_v13, 6  ;;  %v350_v31 = vmul.f32 %v720_v23, %v720_v23  ;;  %v351_v56 = vmul.f32 %v723_v39, %v723_v39 }
  0x4c   :  { %v511_v53 = vpop.eup %510  ;;  %v245_v54 = vmul.f32 0.6931472, %v509_v51  ;;  %v259_v32 = vsel %vm204_vm10, %v258_v26, %v257_v25  ;;  %v262_v55 = vrot.slane %v241_v48, 5  ;;  %v353_v62 = vmul.f32 %v344_v45, %v344_v45 }
  0x4d   :  { %v247_v57 = vmul.f32 0.6931472, %v511_v53  ;;  %v261_v20 = vsel %vm207_vm11, %v260_v27, %v259_v32  ;;  %v264_v59 = vrot.slane %v243_v52, 4  ;;  %v354_v1 = vmul.f32 %v345_v47, %v345_v47 }
  0x4e   :  { %v263_v21 = vsel %vm210_vm12, %v262_v55, %v261_v20  ;;  %v266_v0 = vrot.slane %v245_v54, 3  ;;  %v355_v5 = vmul.f32 %v346_v8, %v346_v8  ;;  %v356_v24 = vmul.f32 %v347_v40, %v347_v40 }
  0x4f   :  { %v265_v10 = vsel %vm213_vm13, %v264_v59, %v263_v21  ;;  %v268_v11 = vrot.slane %v247_v57, 2  ;;  %v357_v28 = vmul.f32 %v348_v16, %v348_v16  ;;  %v358_v30 = vmul.f32 %v349_v49, %v349_v49 }
  0x50   :  { %v267_v29 = vsel %vm216_vm14, %v266_v0, %v265_v10  ;;  %v359_v33 = vmul.f32 %v350_v31, %v350_v31  ;;  %v369_v34 = vrot.slane %v706_v19, 1  ;;  %v371_v38 = vrot.slane %v710_v60, 7 }
  0x51   :  { %v269_v37 = vsel %vm219_vm15, %v268_v11, %v267_v29  ;;  %v373_v41 = vrot.slane %v712_v61, 6  ;;  %v375_v42 = vrot.slane %v715_v22, 5  ;;  %v360_v44 = vmul.f32 %v351_v56, %v351_v56 }
  0x52   :  { %v271_v43 = vmul.f32 %v269_v37, %v619_v2  ;;  %v370_v45 = vsel %vm201_vm9, %v708_v58, %v369_v34  ;;  %v377_v17 = vrot.slane %v717_v15, 4  ;;  %v379_v19 = vrot.slane %v720_v23, 3  ;;  %v444_v15 = vld [vmem:[%s796_s2] ss:$0 sm:$0xff]  ;;  %s536_s2 = smov [#allocation3]  }
  0x53   :  { %v372_v3 = vsel %vm204_vm10, %v371_v38, %v370_v45  ;;  %v392_v35 = vrot.slane %v353_v62, 1  ;;  %v394_v46 = vrot.slane %v355_v5, 7  ;;  %v381_v61 = vrot.slane %v723_v39, 2  ;;  %s436_s30 = sshll.u32 %s536_s2, 4  ;;  %s437_s30 = int_to_ptr.vmem [resolvable:$true] %s436_s30 }
  0x54   :  { %v374_v60 = vsel %vm207_vm11, %v373_v41, %v372_v3  ;;  %v396_v47 = vrot.slane %v356_v24, 6  ;;  %v398_v22 = vrot.slane %v357_v28, 5  ;;  %v272_v36 = vadd.f32 %v271_v43, %v222_v18  ;;  %s512_s6 = scalar_lea.vmem %s437_s30, 16  ;;  %s516_s7 = scalar_lea.vmem %s437_s30, 32 }
  0x55   :  { %v376_v2 = vsel %vm210_vm12, %v375_v42, %v374_v60  ;;  %v393_v4 = vsel %vm201_vm9, %v354_v1, %v392_v35  ;;  %v400_v58 = vrot.slane %v358_v30, 4  ;;  %v402_v7 = vrot.slane %v359_v33, 3  ;;  %p513_p0 = scmp.ne.s32.totalorder %s437_s30, %s512_s6  ;;  %p517_p1 = scmp.lt.s32.totalorder %s437_s30, %s437_s30 }
  0x56   :  { %v378_v23 = vsel %vm213_vm13, %v377_v17, %v376_v2  ;;  %v395_v6 = vsel %vm204_vm10, %v394_v46, %v393_v4  ;;  %v404_v9 = vrot.slane %v360_v44, 2  ;;  %v279_v13 = vmul.f32 %v444_v15, %v272_v36  ;;  %p518_p2 = scmp.lt.s32.totalorder %s516_s7, %s512_s6 }
  0x57   :  { %v380_v8 = vsel %vm216_vm14, %v379_v19, %v378_v23  ;;  %v397_v39 = vsel %vm207_vm11, %v396_v47, %v395_v6  ;;  %vm428_vm2 = vcmask 0  }
  0x58   :  { %v399_v12 = vsel %vm210_vm12, %v398_v22, %v397_v39  ;;  %v382_v40 = vsel %vm219_vm15, %v381_v61, %v380_v8  ;;  %p519_p3 = por %p518_p2, %p517_p1 }
  0x59   :  { %v401_v16 = vsel %vm213_vm13, %v400_v58, %v399_v12 }
  0x5a   :  { %v403_v14 = vsel %vm216_vm14, %v402_v7, %v401_v16  ;;  %p520_p4 = pnand %p519_p3, %p513_p0 }
  0x5b   :  { %v405_v48 = vsel %vm219_vm15, %v404_v9, %v403_v14 }
  0x5c   :  { %v407_v25 = vsel %vm352_vm1, %v382_v40, %v405_v48 }
  0x5d   :  { %v408_v26 = vmul.f32 %v407_v25, %v279_v13 }
  0x5f   :  { %v410_v49 = vsel %vm30_vm0, %v408_v26, 0.0 }
  0x60   :  { %417 = vadd.xlane.f32.xlu0 %v410_v49 }
  0xed   :  { %v418_v51 = vpop.xlane.xlu0 %417 }
  0xee   :  { %v419_v18 = vrot.slane %v418_v51, 4 }
  0xf0   :  { %v420_v52 = vadd.f32 %v419_v18, %v418_v51 }
  0xf2   :  { %v421_v27 = vrot.slane %v420_v52, 2 }
  0xf4   :  { %v422_v31 = vadd.f32 %v421_v27, %v420_v52 }
  0xf6   :  { %v423_v63 = vrot.slane %v422_v31, 1 }
  0xf8   :  { %v424_v53 = vadd.f32 %v423_v63, %v422_v31 }
  0xfa   :  { %445 = vpush %v424_v53 }
 0x12b   :  { %s446_s4 = spop %445 }
 0x12c   :  { %s426_s5 = ssub.f32 0.0, %s446_s4 }
 0x12e   :  { %v427_v54 = vstv %s426_s5 }
 0x12f   :  { %429 = vst.msk [vmem:[#allocation3] sm:$0x1] %vm428_vm2, %v427_v54 }
 0x130   :  { %523 = shalt.err (!%p520_p4)
}
 0x131   :  { %s524_s10 = scalar_lea.hbm %s797_s3, 16 }
 0x132   :  { %p525_p5 = scmp.ne.s32.totalorder %s797_s3, %s524_s10  ;;  %p528_p6 = scmp.lt.u32.totalorder %s524_s10, %s797_s3 }
 0x134   :  { %p530_p7 = pnand %p528_p6, %p525_p5 }
 0x136   :  { %533 = shalt.err (!%p530_p7)
}
 0x137   :  { %439 = dma.vmem_to_hbm [thread:$0]  %s437_s30, 16, %s797_s3, [#allocation4]  }
 0x138   :  { %534 = dma.done.wait [#allocation4], 16  }
 0x139   :  { %535 = vsyncadd [#allocation4], 4294967280 }
 0x13a   :  { %443 = vsyncpa [#allocation4], 1 }

</bundles_post_ra>
